<compile_context>
chip_gen: v7x
topology: tpu7x:2x2x1
jax: 0.10.0
libtpu: 0.0.40
codegen_flags: <defaults>
</compile_context>

<pallas_src>
import jax
import jax.numpy as jnp
from jax.experimental import pallas as pl
from jax.experimental.pallas import tpu as pltpu

EPS = 1e-5


def _round_up(a, m):
    return (a + m - 1) // m * m


def _vmem_cap_bytes():
    """Generation-aware VMEM budget: ~7/8 of physical per-core VMEM."""
    phys = 64 << 20                                  # conservative fallback (v7x)
    try:
        info = pltpu.get_tpu_info()
        cap = getattr(info, "vmem_capacity_bytes", None)
        if cap:
            phys = int(cap)
    except Exception:
        pass
    return (phys * 7) // 8


# ---------------------------------------------------------------------------
# Pass 1: per-feature sum and sum-of-squares.  Grid = (C, steps); the leading
# axis is "parallel" so v7x's two TensorCores each reduce half of the rows into
# their own (8, H) partial block; the inner axis accumulates into the resident
# output.  The cross-row reduction runs on the MXU (ones-row dot), keeping the
# XLU/VPU free.
# ---------------------------------------------------------------------------
def stats_kernel(x_ref, sum_ref, sq_ref):
    @pl.when(pl.program_id(1) == 0)
    def _():
        sum_ref[...] = jnp.zeros_like(sum_ref)
        sq_ref[...] = jnp.zeros_like(sq_ref)

    x = x_ref[...].astype(jnp.float32)                        # (TM, H)
    ones = jnp.ones((sum_ref.shape[0], x.shape[0]), jnp.float32)   # (8, TM)
    sum_ref[...] += jnp.dot(ones, x, preferred_element_type=jnp.float32)
    sq_ref[...] += jnp.dot(ones, x * x, preferred_element_type=jnp.float32)


# ---------------------------------------------------------------------------
# Pass 2: BatchNorm affine already folded into (w_eff, b_eff), so the body is
#   out = x + x_bf16 @ w_eff + b_eff   (MXU, f32 accumulation).
# ---------------------------------------------------------------------------
def apply_kernel(x_ref, w_ref, b_ref, o_ref):
    x = x_ref[...]                                            # (TM, H)
    y = jnp.dot(x.astype(w_ref.dtype), w_ref[...],
                preferred_element_type=jnp.float32)           # (TM, TN)
    y = y + b_ref[...]
    tn = o_ref.shape[-1]
    if tn == x_ref.shape[-1]:                                 # single column tile
        x_res = x.astype(jnp.float32)
    else:                                                     # column-tiled weight
        col = pl.multiple_of(pl.program_id(1) * tn, 128)
        x_res = x_ref[:, pl.ds(col, tn)].astype(jnp.float32)
    # --- dropout: identity at inference ---
    # TODO(synk): training-mode dropout (pltpu.prng_random_bits mask) not applied.
    o_ref[...] = (x_res + y).astype(o_ref.dtype)


def sublayer_connection(x, w, b, gamma, beta, *, tm=512):
    """x: (B, S, H) -> (B, S, H); params: w (H, H), b/gamma/beta (1, H)."""
    B, S, H = x.shape
    N = B * S
    x2 = x.reshape(N, H)                # contiguous reshape: no HBM copy

    cap = _vmem_cap_bytes()
    itemsize = jnp.dtype(x.dtype).itemsize

    # ----- row tile: prefer a tile that divides N (no row padding needed).
    if N <= tm:
        TM = N                          # block dim == full array dim: always legal
    else:
        TM = (min(tm, N) // 8) * 8
        while TM > 8 and N % TM != 0:
            TM -= 8
        if N % TM != 0:
            TM = min(tm, _round_up(N, 8))   # row-padding fallback (rare)

    # ----- column tile for the weight/output: caps weight VMEM at ~8 MiB.
    if H % 128 == 0:
        tn_cap = max(128, ((8 << 20) // (2 * H)) // 128 * 128)
        TN = min(H, tn_cap)
        while H % TN != 0:
            TN -= 128
    else:
        TN = H                          # full-dim block is legal for any H

    # ----- shrink TM until the pass-2 working set (incl. temporaries) fits.
    def pass2_bytes(tm_, tn_):
        wbufs = 1 if tn_ == H else 2    # constant-index weight: single-buffered
        return (2 * tm_ * H * itemsize          # x tile, double-buffered
                + 2 * tm_ * tn_ * itemsize      # out tile, double-buffered
                + wbufs * H * tn_ * 2           # bf16 effective weight
                + 2 * tn_ * 4                   # folded bias
                + tm_ * H * 2                   # bf16 cast of x (temp)
                + 2 * tm_ * tn_ * 4)            # f32 matmul acc + residual temp

    while pass2_bytes(TM, TN) + (4 << 20) > cap and TM % 16 == 0 and TM >= 32:
        TM //= 2

    # ----- row padding only if no divisor-friendly TM exists.
    if N % TM == 0:
        Np, x2p = N, x2
    else:
        Np = _round_up(N, TM)
        x2p = jnp.zeros((Np, H), x.dtype).at[:N].set(x2)

    n_row = Np // TM
    # Split pass 1 across TensorCores when the row tiles divide evenly in two.
    C = 2 if (n_row % 2 == 0 and n_row >= 2) else 1
    steps = n_row // C

    # ---------------- Pass 1: global per-feature sums ----------------
    vmem1 = int(min(cap, 2 * TM * H * itemsize + 3 * TM * H * 4 + (4 << 20)))
    s, sq = pl.pallas_call(
        stats_kernel,
        out_shape=(jax.ShapeDtypeStruct((C * 8, H), jnp.float32),
                   jax.ShapeDtypeStruct((C * 8, H), jnp.float32)),
        grid=(C, steps),
        in_specs=[pl.BlockSpec((TM, H), lambda c, i: (c * steps + i, 0))],
        out_specs=(pl.BlockSpec((8, H), lambda c, i: (c, 0)),
                   pl.BlockSpec((8, H), lambda c, i: (c, 0))),
        compiler_params=pltpu.CompilerParams(
            dimension_semantics=("parallel", "arbitrary"),
            vmem_limit_bytes=vmem1),
    )(x2p)

    # ----- finalize stats and fold the BatchNorm affine into the Linear.
    # Padded rows are zero and contribute nothing; divide by the true N.
    # TODO(synk): PyTorch eval() would use running stats; this matches
    # training-mode normalization (no running-stat update / momentum).
    # TODO(synk): E[x^2]-mean^2 can cancel for strongly offset inputs; a
    # centered second pass / Welford accumulation would be more robust.
    s0 = s.reshape(C, 8, H)[:, 0, :]                 # rows within a block are equal
    sq0 = sq.reshape(C, 8, H)[:, 0, :]
    inv_n = 1.0 / float(N)
    mean = jnp.sum(s0, axis=0, keepdims=True) * inv_n                # (1, H)
    var = jnp.maximum(jnp.sum(sq0, axis=0, keepdims=True) * inv_n
                      - mean * mean, 0.0)                            # biased var
    rstd = jax.lax.rsqrt(var + EPS)
    a = rstd * gamma.astype(jnp.float32)                             # (1, H)
    c = beta.astype(jnp.float32) - mean * a                          # (1, H)
    w32 = w.astype(jnp.float32)
    w_eff = (a.reshape(H, 1) * w32).astype(jnp.bfloat16)             # (H, H) bf16
    b_eff = c @ w32 + b.astype(jnp.float32)                          # (1, H) f32

    # ---------------- Pass 2: out = x + x @ w_eff + b_eff ----------------
    vmem2 = int(min(cap, max(pass2_bytes(TM, TN) + (4 << 20), 16 << 20)))
    const_mode = pl.Buffered(1) if TN == H else None   # single-buffer constant blocks

    out = pl.pallas_call(
        apply_kernel,
        out_shape=jax.ShapeDtypeStruct((Np, H), x.dtype),
        grid=(n_row, H // TN),
        in_specs=[
            pl.BlockSpec((TM, H), lambda i, j: (i, 0)),   # x rows, resident over j
            pl.BlockSpec((H, TN), lambda i, j: (0, j), pipeline_mode=const_mode),
            pl.BlockSpec((1, TN), lambda i, j: (0, j), pipeline_mode=const_mode),
        ],
        out_specs=pl.BlockSpec((TM, TN), lambda i, j: (i, j)),
        compiler_params=pltpu.CompilerParams(
            dimension_semantics=("parallel", "arbitrary"),
            vmem_limit_bytes=vmem2),
    )(x2p, w_eff, b_eff)

    # TODO(synk): for small N*H a single fused pallas_call (x resident in VMEM)
    # would read x from HBM once instead of twice.
    if Np != N:
        out = out[:N]
    return out.reshape(B, S, H)


if __name__ == "__main__":
    key = jax.random.PRNGKey(0)
    B, S, H = 2, 8, 32  # batch, seq, hidden (= `size` in the module)

    kx, kw, kb = jax.random.split(key, 3)
    x = jax.random.normal(kx, (B, S, H), dtype=jnp.float32)

    # Sublayer = Linear(H, H), deterministic init.
    w = jax.random.normal(kw, (H, H), dtype=jnp.float32) * (1.0 / jnp.sqrt(H))
    b = jax.random.normal(kb, (1, H), dtype=jnp.float32) * 0.01

    # BatchNorm1d default affine params.
    gamma = jnp.ones((1, H), dtype=jnp.float32)
    beta = jnp.zeros((1, H), dtype=jnp.float32)

    out = sublayer_connection(x, w, b, gamma, beta)
    jax.block_until_ready(out)

    # Reference mirroring the kernel's folded-affine / bf16-operand matmul.
    x2 = x.reshape(-1, H).astype(jnp.float32)
    mean = jnp.mean(x2, axis=0, keepdims=True)
    var = jnp.mean((x2 - mean) ** 2, axis=0, keepdims=True)
    rstd = jax.lax.rsqrt(var + EPS)
    a = rstd * gamma
    c = beta - mean * a
    w_eff = (a.reshape(H, 1) * w).astype(jnp.bfloat16).astype(jnp.float32)
    b_eff = c @ w + b
    x_bf = x2.astype(jnp.bfloat16).astype(jnp.float32)
    ref = (x2 + x_bf @ w_eff + b_eff).reshape(B, S, H)
    assert jnp.allclose(out, ref, atol=5e-3, rtol=5e-3), "mismatch vs reference"

    print("KERNEL_OK")
</pallas_src>

<mosaic_0001>
module attributes {stable_mosaic.version = 11 : i64} {
  func.func @stats_kernel(%arg0: i32, %arg1: i32, %arg2: memref<16x32xf32, #tpu.memory_space<vmem>>, %arg3: memref<8x32xf32, #tpu.memory_space<vmem>>, %arg4: memref<8x32xf32, #tpu.memory_space<vmem>>) attributes {dimension_semantics = [#tpu.dimension_semantics<parallel>, #tpu.dimension_semantics<arbitrary>], iteration_bounds = array<i64: 1, 1>, scalar_prefetch = 0 : i64, scratch_operands = 0 : i64, tpu.core_type = #tpu.core_type<tc>, window_params = [{transform_indices = @transform_0, window_bounds = array<i64: 16, 32>}, {transform_indices = @transform_1, window_bounds = array<i64: 8, 32>}, {transform_indices = @transform_2, window_bounds = array<i64: 8, 32>}]} {
    %c0_i32 = arith.constant 0 : i32
    %0 = arith.cmpi eq, %arg1, %c0_i32 : i32
    %1 = arith.extui %0 : i1 to i32
    %c0_i32_0 = arith.constant 0 : i32
    %2 = arith.cmpi ne, %1, %c0_i32_0 : i32
    scf.if %2 {
      %cst_12 = arith.constant 0.000000e+00 : f32
      %14 = vector.broadcast %cst_12 : f32 to vector<8x32xf32>
      %c0_13 = arith.constant 0 : index
      %c0_14 = arith.constant 0 : index
      %15 = vector.load %arg3[%c0_13, %c0_14] : memref<8x32xf32, #tpu.memory_space<vmem>>, vector<8x32xf32>
      tpu.vector_store %arg3[%c0_13, %c0_14], %14 {strides = array<i32>} : memref<8x32xf32, #tpu.memory_space<vmem>>, vector<8x32xf32>,
      %cst_15 = arith.constant 0.000000e+00 : f32
      %16 = vector.broadcast %cst_15 : f32 to vector<8x32xf32>
      %c0_16 = arith.constant 0 : index
      %c0_17 = arith.constant 0 : index
      %17 = vector.load %arg4[%c0_16, %c0_17] : memref<8x32xf32, #tpu.memory_space<vmem>>, vector<8x32xf32>
      tpu.vector_store %arg4[%c0_16, %c0_17], %16 {strides = array<i32>} : memref<8x32xf32, #tpu.memory_space<vmem>>, vector<8x32xf32>,
    } else {
    }
    %c0 = arith.constant 0 : index
    %c0_1 = arith.constant 0 : index
    %3 = vector.load %arg2[%c0, %c0_1] : memref<16x32xf32, #tpu.memory_space<vmem>>, vector<16x32xf32>
    %cst = arith.constant 1.000000e+00 : f32
    %4 = vector.broadcast %cst : f32 to vector<8x16xf32>
    %c0_2 = arith.constant 0 : index
    %c0_3 = arith.constant 0 : index
    %5 = vector.load %arg3[%c0_2, %c0_3] : memref<8x32xf32, #tpu.memory_space<vmem>>, vector<8x32xf32>
    %cst_4 = arith.constant dense<0.000000e+00> : vector<8x32xf32>
    %6 = tpu.matmul %4, %3, %cst_4 {dimension_numbers = #tpu.dot_dimension_numbers<[1], [0], [0], [1], [0, 0, 1, 1], [], []>} : vector<8x16xf32>, vector<16x32xf32>, vector<8x32xf32> -> vector<8x32xf32>
    %7 = arith.addf %5, %6 : vector<8x32xf32>
    %c0_5 = arith.constant 0 : index
    %c0_6 = arith.constant 0 : index
    %8 = vector.load %arg3[%c0_5, %c0_6] : memref<8x32xf32, #tpu.memory_space<vmem>>, vector<8x32xf32>
    tpu.vector_store %arg3[%c0_5, %c0_6], %7 {strides = array<i32>} : memref<8x32xf32, #tpu.memory_space<vmem>>, vector<8x32xf32>,
    %c0_7 = arith.constant 0 : index
    %c0_8 = arith.constant 0 : index
    %9 = vector.load %arg4[%c0_7, %c0_8] : memref<8x32xf32, #tpu.memory_space<vmem>>, vector<8x32xf32>
    %10 = arith.mulf %3, %3 : vector<16x32xf32>
    %cst_9 = arith.constant dense<0.000000e+00> : vector<8x32xf32>
    %11 = tpu.matmul %4, %10, %cst_9 {dimension_numbers = #tpu.dot_dimension_numbers<[1], [0], [0], [1], [0, 0, 1, 1], [], []>} : vector<8x16xf32>, vector<16x32xf32>, vector<8x32xf32> -> vector<8x32xf32>
    %12 = arith.addf %9, %11 : vector<8x32xf32>
    %c0_10 = arith.constant 0 : index
    %c0_11 = arith.constant 0 : index
    %13 = vector.load %arg4[%c0_10, %c0_11] : memref<8x32xf32, #tpu.memory_space<vmem>>, vector<8x32xf32>
    tpu.vector_store %arg4[%c0_10, %c0_11], %12 {strides = array<i32>} : memref<8x32xf32, #tpu.memory_space<vmem>>, vector<8x32xf32>,
    return
  }
  func.func @transform_0(%arg0: i32, %arg1: i32) -> (i32, i32) {
    %c1_i32 = arith.constant 1 : i32
    %0 = arith.muli %arg0, %c1_i32 : i32
    %1 = arith.addi %0, %arg1 : i32
    %c0_i32 = arith.constant 0 : i32
    %c0_i32_0 = arith.constant 0 : i32
    return %1, %c0_i32 : i32, i32
  }
  func.func @transform_1(%arg0: i32, %arg1: i32) -> (i32, i32) {
    %c0_i32 = arith.constant 0 : i32
    %c0_i32_0 = arith.constant 0 : i32
    return %arg0, %c0_i32 : i32, i32
  }
  func.func @transform_2(%arg0: i32, %arg1: i32) -> (i32, i32) {
    %c0_i32 = arith.constant 0 : i32
    %c0_i32_0 = arith.constant 0 : i32
    return %arg0, %c0_i32 : i32, i32
  }
}

</mosaic_0001>

<bundles_post_ra>
// kernel: tpu_custom_call.1
= control target key start
LH: loop header
LB: loop body
LE: loop exit
PB: predicated region body
PF: predicated region fallthrough
CT: control target
= control target key end

     0   :  { %8 = vsyncpa [#allocation3], 0  ;;  %s396_s0 = inlined_call_operand.hbm [shape: f32[16,32], index: 0, kind: input, shape index: {}]   ;;  %s397_s1 = inlined_call_operand.hbm [shape: f32[8,32], index: 1, kind: output, shape index: {0}]   ;;  %s398_s2 = inlined_call_operand.hbm [shape: f32[8,32], index: 2, kind: output, shape index: {1}]  }
   0x1   :  { %9 = vsyncpa [#allocation4], 0 }
   0x2   :  { %10 = vsyncpa [#allocation7], 0  ;;  %s332_s9 = smov [#allocation2]   ;;  %s260_s13 = scalar_lea.hbm %s396_s0, 256 }
   0x3   :  { %s20_s10 = sshll.u32 %s332_s9, 4  ;;  %p261_p0 = scmp.ne.s32.totalorder %s396_s0, %s260_s13  ;;  %s21_s10 = int_to_ptr.vmem [resolvable:$true] %s20_s10 }
   0x4   :  { %p264_p1 = scmp.lt.u32.totalorder %s260_s13, %s396_s0 }
   0x6   :  { %p266_p2 = pnand %p264_p1, %p261_p0 }
   0x8   :  { %269 = shalt.err (!%p266_p2)
}
   0x9   :  { %s270_s18 = scalar_lea.vmem %s21_s10, 256  ;;  %p275_p4 = scmp.lt.s32.totalorder %s21_s10, %s21_s10 }
   0xa   :  { %p271_p3 = scmp.ne.s32.totalorder %s21_s10, %s270_s18  ;;  %p276_p5 = scmp.lt.s32.totalorder %s270_s18, %s270_s18 }
   0xc   :  { %p277_p6 = por %p276_p5, %p275_p4 }
   0xe   :  { %p278_p7 = pnand %p277_p6, %p271_p3 }
  0x10   :  { %281 = shalt.err (!%p278_p7)
}
  0x11   :  { %s333_s19 = smov 128   ;;  %s334_s20 = smov 8  }
  0x12   :  { %26 = dma.hbm_to_vmem [thread:$0]  %s396_s0, 256, %s21_s10, [#allocation3], %s333_s19, %s333_s19, %s334_s20  }
  0x13   :  { %326 = dma.done.wait [#allocation3], 256  }
  0x14   :  { %327 = vsyncadd [#allocation3], 4294967040  ;;  %vm36_vm0 = vcmask 261120   ;;  %v335_v0 = vmov 0.0|0.0   ;;  %v336_v1 = vmov 0.0   ;;  %vm337_vm1 = vmmov 0  }
  0x15   :  { %245 = vmatprep.subr.bf16.mxu0 %v335_v0  ;;  %248 = vmatprep.subr.bf16.mxu1 %v335_v0  ;;  %37 = vst.msk [vmem:[#allocation5] sm:$0xff] %vm36_vm0, %v336_v1  ;;  %38 = vst.msk [vmem:[#allocation6] sm:$0xff] %vm36_vm0, %v336_v1  ;;  %v39_v2 = vld [vmem:[#allocation2] sm:$0xff]  ;;  %v40_v3 = vld [vmem:[#allocation2 + $0x8] sm:$0xff]  ;;  %vm42_vm2 = vcmask 130048   ;;  %v338_v8 = vmov 1.0  }
  0x16   :  { %235 = vmatprep.mubr.msk.f32.mxu0 %vm337_vm1, %v336_v1  ;;  %242 = vmatprep.mubr.msk.f32.mxu1 %vm337_vm1, %v336_v1  ;;  %v246_v4 = vpack.c.bf16 %v40_v3, %v39_v2  ;;  %v120_v5 = vmul.f32 %v39_v2, %v39_v2  ;;  %v121_v6 = vmul.f32 %v40_v3, %v40_v3  ;;  %s339_s0 = smov [#allocation5]   ;;  %s340_s24 = smov [#allocation6]  }
  0x17   :  { %s200_s23 = sshll.u32 %s339_s0, 4  ;;  %s210_s25 = sshll.u32 %s340_s24, 4  ;;  %s201_s23 = int_to_ptr.vmem [resolvable:$true] %s200_s23  ;;  %s211_s25 = int_to_ptr.vmem [resolvable:$true] %s210_s25 }
  0x18   :  { %247 = vmatpush3.bf16.msra.mxu0 %v246_v4  ;;  %v249_v7 = vpack.c.bf16 %v121_v6, %v120_v5  ;;  %s282_s26 = scalar_lea.vmem %s201_s23, 128  ;;  %p287_p9 = scmp.lt.s32.totalorder %s201_s23, %s201_s23 }
  0x19   :  { %p283_p8 = scmp.ne.s32.totalorder %s201_s23, %s282_s26  ;;  %p288_p10 = scmp.lt.s32.totalorder %s282_s26, %s282_s26 }
  0x1a   :  { %250 = vmatpush3.bf16.msra.mxu1 %v249_v7 }
  0x1b   :  { %236 = vmatmul.mubr.msk.f32.vlgmr.msra.gmra.mrb[0].mxu0 %vm42_vm2, %v338_v8  ;;  %p289_p11 = por %p288_p10, %p287_p9 }
  0x1c   :  { %v41_v9 = vld [vmem:[#allocation5] sm:$0xff]  ;;  %v119_v11 = vld [vmem:[#allocation6] sm:$0xff] }
  0x1d   :  { %243 = vmatmul.mubr.msk.f32.vlgmr.msra.gmra.mrb[0].mxu1 %vm42_vm2, %v338_v8  ;;  %p290_p12 = pnand %p289_p11, %p283_p8 }
  0xee   :  { %v112_v10 = vpop.f32.mrb[0].mxu0 }
  0xef   :  { %v116_v12 = vadd.f32 %v112_v10, %v41_v9  ;;  %v237_v13 = vpop.f32.mrb[1].mxu0 }
  0xf0   :  { %v188_v14 = vpop.f32.mrb[0].mxu1 }
  0xf1   :  { %118 = vst.msk [vmem:[#allocation5] sm:$0xff] %vm36_vm0, %v116_v12  ;;  %v192_v15 = vadd.f32 %v188_v14, %v119_v11  ;;  %v244_v16 = vpop.f32.mrb[1].mxu1 }
  0xf2   :  { %293 = shalt.err (!%p290_p12)
}
  0xf3   :  { %s294_s29 = scalar_lea.hbm %s397_s1, 128 }
  0xf4   :  { %p295_p13 = scmp.ne.s32.totalorder %s397_s1, %s294_s29  ;;  %p298_p0 = scmp.lt.u32.totalorder %s294_s29, %s397_s1 }
  0xf6   :  { %p300_p1 = pnand %p298_p0, %p295_p13 }
  0xf8   :  { %303 = shalt.err (!%p300_p1)
}
  0xf9   :  { %203 = dma.vmem_to_hbm [thread:$0]  %s201_s23, 128, %s397_s1, [#allocation4]   ;;  %193 = vst.msk [vmem:[#allocation6] sm:$0xff] %vm36_vm0, %v192_v15 }
  0xfa   :  { %s304_s8 = scalar_lea.vmem %s211_s25, 128  ;;  %p309_p3 = scmp.lt.s32.totalorder %s211_s25, %s211_s25 }
  0xfb   :  { %p305_p2 = scmp.ne.s32.totalorder %s211_s25, %s304_s8  ;;  %p310_p4 = scmp.lt.s32.totalorder %s304_s8, %s304_s8 }
  0xfd   :  { %p311_p5 = por %p310_p4, %p309_p3 }
  0xff   :  { %p312_p6 = pnand %p311_p5, %p305_p2 }
 0x101   :  { %315 = shalt.err (!%p312_p6)
}
 0x102   :  { %s316_s11 = scalar_lea.hbm %s398_s2, 128 }
 0x103   :  { %p317_p7 = scmp.ne.s32.totalorder %s398_s2, %s316_s11  ;;  %p320_p8 = scmp.lt.u32.totalorder %s316_s11, %s398_s2 }
 0x105   :  { %p322_p9 = pnand %p320_p8, %p317_p7 }
 0x107   :  { %325 = shalt.err (!%p322_p9)
}
 0x108   :  { %213 = dma.vmem_to_hbm [thread:$0]  %s211_s25, 128, %s398_s2, [#allocation7]  }
 0x109   :  { %328 = dma.done.wait [#allocation4], 128  }
 0x10a   :  { %329 = vsyncadd [#allocation4], 4294967168 }
 0x10b   :  { %330 = dma.done.wait [#allocation7], 128  }
 0x10c   :  { %331 = vsyncadd [#allocation7], 4294967168 }
 0x10d   :  { %220 = vsyncpa [#allocation3], 1 }
 0x10e   :  { %221 = vsyncpa [#allocation4], 1 }
 0x10f   :  { %222 = vsyncpa [#allocation7], 1 }

</bundles_post_ra>
